<compile_context>
chip_gen: v7x
topology: tpu7x:2x2x1
jax: 0.10.0
libtpu: 0.0.40
codegen_flags: <defaults>
</compile_context>

<pallas_src>
import math

import jax
import jax.numpy as jnp
from jax.experimental import pallas as pl
from jax.experimental.pallas import tpu as pltpu


def mlp_kernel(x_ref, w1_ref, b1_ref, w2_ref, b2_ref, o_ref):
    # x_ref: (tm, in_dim); w1: (in_dim, mid); b1: (1, mid);
    # w2: (mid, out_dim); b2: (1, out_dim); o_ref: (tm, out_dim)
    x = x_ref[...]
    h = jnp.dot(x, w1_ref[...], preferred_element_type=jnp.float32) + b1_ref[...]
    h = jnp.where(h >= 0, h, 0.1 * h)                      # LeakyReLU(0.1)
    y = jnp.dot(h, w2_ref[...], preferred_element_type=jnp.float32) + b2_ref[...]
    o_ref[...] = y.astype(o_ref.dtype)


def mlp_pallas(x, w1, b1, w2, b2, *, block_m=256):
    """Fused MLP forward.

    x : (..., in_dim)
    w1: (middle_dim, in_dim)  b1: (middle_dim,)     (PyTorch nn.Linear layout)
    w2: (out_dim, middle_dim) b2: (out_dim,)
    returns (..., out_dim)
    """
    in_dim = x.shape[-1]
    mid = w1.shape[0]
    out_dim = w2.shape[0]
    lead = x.shape[:-1]
    M = int(math.prod(lead)) if lead else 1

    x2 = x.reshape(M, in_dim).astype(jnp.float32)

    # Right-multiply layouts so output channels land on the lane (fast) axis.
    w1_t = jnp.transpose(w1).astype(jnp.float32)           # (in_dim, mid)
    w2_t = jnp.transpose(w2).astype(jnp.float32)           # (mid, out_dim)
    b1_r = b1.reshape(1, mid).astype(jnp.float32)
    b2_r = b2.reshape(1, out_dim).astype(jnp.float32)

    # Row tile: either the whole M, or a multiple of 8 (sublane constraint).
    tm = min(block_m, M)
    if tm != M:
        tm = max(8, (tm // 8) * 8)
    m_pad = pl.cdiv(M, tm) * tm
    if m_pad != M:
        x2 = jnp.pad(x2, ((0, m_pad - M), (0, 0)))

    grid = (m_pad // tm,)

    flops = 2 * m_pad * in_dim * mid + 2 * m_pad * mid * out_dim
    bytes_accessed = 4 * (m_pad * in_dim + m_pad * out_dim
                          + in_dim * mid + mid * out_dim + mid + out_dim)

    out = pl.pallas_call(
        mlp_kernel,
        out_shape=jax.ShapeDtypeStruct((m_pad, out_dim), jnp.float32),
        grid_spec=pltpu.PrefetchScalarGridSpec(
            num_scalar_prefetch=0,
            grid=grid,
            in_specs=[
                pl.BlockSpec((tm, in_dim), lambda i: (i, 0)),        # x rows
                pl.BlockSpec((in_dim, mid), lambda i: (0, 0)),       # w1 (resident)
                pl.BlockSpec((1, mid), lambda i: (0, 0)),            # b1 (resident)
                pl.BlockSpec((mid, out_dim), lambda i: (0, 0)),      # w2 (resident)
                pl.BlockSpec((1, out_dim), lambda i: (0, 0)),        # b2 (resident)
            ],
            out_specs=pl.BlockSpec((tm, out_dim), lambda i: (i, 0)),
        ),
        compiler_params=pltpu.CompilerParams(
            dimension_semantics=("parallel",)),
        cost_estimate=pl.CostEstimate(
            flops=flops, transcendentals=0, bytes_accessed=bytes_accessed),
    )(x2, w1_t, b1_r, w2_t, b2_r)

    out = out[:M]
    return out.reshape(*lead, out_dim) if lead else out.reshape(out_dim)


def mlp_reference(x, w1, b1, w2, b2):
    """Pure-JAX reference matching PyTorch nn.Linear / LeakyReLU(0.1) semantics."""
    h = jnp.einsum("...i,oi->...o", x, w1) + b1
    h = jnp.where(h >= 0, h, 0.1 * h)
    y = jnp.einsum("...i,oi->...o", h, w2) + b2
    return y


if __name__ == "__main__":
    # Small shapes consistent with the module: batch=4, seq=16, in=32, mid=64, out=48.
    B, S, IN, MID, OUT = 4, 16, 32, 64, 48

    key = jax.random.PRNGKey(0)
    kx, kw1, kb1, kw2, kb2 = jax.random.split(key, 5)

    x = jax.random.normal(kx, (B, S, IN), dtype=jnp.float32)
    # PyTorch nn.Linear parameter layouts: weight (out_features, in_features), bias (out_features,)
    w1 = jax.random.normal(kw1, (MID, IN), dtype=jnp.float32) * 0.1
    b1 = jax.random.normal(kb1, (MID,), dtype=jnp.float32) * 0.1
    w2 = jax.random.normal(kw2, (OUT, MID), dtype=jnp.float32) * 0.1
    b2 = jax.random.normal(kb2, (OUT,), dtype=jnp.float32) * 0.1

    # block_m=32 exercises the grid path (M = 64 rows -> 2 grid steps).
    out = mlp_pallas(x, w1, b1, w2, b2, block_m=32)
    out = jax.block_until_ready(out)

    ref = mlp_reference(x, w1, b1, w2, b2)
    assert out.shape == (B, S, OUT)
    assert jnp.allclose(out, ref, atol=1e-4, rtol=1e-4), "mismatch vs reference"

    print("KERNEL_OK")
</pallas_src>

<mosaic_0001>
module attributes {stable_mosaic.version = 11 : i64} {
  func.func @mlp_kernel(%arg0: i32, %arg1: memref<32x32xf32, #tpu.memory_space<vmem>>, %arg2: memref<32x64xf32, #tpu.memory_space<vmem>>, %arg3: memref<1x64xf32, #tpu.memory_space<vmem>>, %arg4: memref<64x48xf32, #tpu.memory_space<vmem>>, %arg5: memref<1x48xf32, #tpu.memory_space<vmem>>, %arg6: memref<32x48xf32, #tpu.memory_space<vmem>>) attributes {dimension_semantics = [#tpu.dimension_semantics<parallel>], iteration_bounds = array<i64: 2>, scalar_prefetch = 0 : i64, scratch_operands = 0 : i64, tpu.core_type = #tpu.core_type<tc>, window_params = [{transform_indices = @transform_0, window_bounds = array<i64: 32, 32>}, {pipeline_mode = #tpu.pipeline_mode<synchronous>, transform_indices = @transform_1, window_bounds = array<i64: 32, 64>}, {pipeline_mode = #tpu.pipeline_mode<synchronous>, transform_indices = @transform_2, window_bounds = array<i64: 1, 64>}, {pipeline_mode = #tpu.pipeline_mode<synchronous>, transform_indices = @transform_3, window_bounds = array<i64: 64, 48>}, {pipeline_mode = #tpu.pipeline_mode<synchronous>, transform_indices = @transform_4, window_bounds = array<i64: 1, 48>}, {transform_indices = @transform_5, window_bounds = array<i64: 32, 48>}]} {
    %c0 = arith.constant 0 : index
    %c0_0 = arith.constant 0 : index
    %0 = vector.load %arg1[%c0, %c0_0] : memref<32x32xf32, #tpu.memory_space<vmem>>, vector<32x32xf32>
    %c0_1 = arith.constant 0 : index
    %c0_2 = arith.constant 0 : index
    %1 = vector.load %arg2[%c0_1, %c0_2] : memref<32x64xf32, #tpu.memory_space<vmem>>, vector<32x64xf32>
    %cst = arith.constant dense<0.000000e+00> : vector<32x64xf32>
    %2 = tpu.matmul %0, %1, %cst {dimension_numbers = #tpu.dot_dimension_numbers<[1], [0], [0], [1], [0, 0, 1, 1], [], []>} : vector<32x32xf32>, vector<32x64xf32>, vector<32x64xf32> -> vector<32x64xf32>
    %c0_3 = arith.constant 0 : index
    %c0_4 = arith.constant 0 : index
    %3 = vector.load %arg3[%c0_3, %c0_4] : memref<1x64xf32, #tpu.memory_space<vmem>>, vector<1x64xf32>
    %4 = vector.broadcast %3 : vector<1x64xf32> to vector<32x64xf32>
    %5 = arith.addf %2, %4 : vector<32x64xf32>
    %cst_5 = arith.constant 0.000000e+00 : f32
    %6 = vector.broadcast %cst_5 : f32 to vector<32x64xf32>
    %7 = arith.cmpf oge, %5, %6 : vector<32x64xf32>
    %cst_6 = arith.constant 1.000000e-01 : f32
    %8 = vector.broadcast %cst_6 : f32 to vector<32x64xf32>
    %9 = arith.mulf %8, %5 : vector<32x64xf32>
    %10 = arith.select %7, %5, %9 : vector<32x64xi1>, vector<32x64xf32>
    %c0_7 = arith.constant 0 : index
    %c0_8 = arith.constant 0 : index
    %11 = vector.load %arg4[%c0_7, %c0_8] : memref<64x48xf32, #tpu.memory_space<vmem>>, vector<64x48xf32>
    %cst_9 = arith.constant dense<0.000000e+00> : vector<32x48xf32>
    %12 = tpu.matmul %10, %11, %cst_9 {dimension_numbers = #tpu.dot_dimension_numbers<[1], [0], [0], [1], [0, 0, 1, 1], [], []>} : vector<32x64xf32>, vector<64x48xf32>, vector<32x48xf32> -> vector<32x48xf32>
    %c0_10 = arith.constant 0 : index
    %c0_11 = arith.constant 0 : index
    %13 = vector.load %arg5[%c0_10, %c0_11] : memref<1x48xf32, #tpu.memory_space<vmem>>, vector<1x48xf32>
    %14 = vector.broadcast %13 : vector<1x48xf32> to vector<32x48xf32>
    %15 = arith.addf %12, %14 : vector<32x48xf32>
    %c0_12 = arith.constant 0 : index
    %c0_13 = arith.constant 0 : index
    %16 = vector.load %arg6[%c0_12, %c0_13] : memref<32x48xf32, #tpu.memory_space<vmem>>, vector<32x48xf32>
    tpu.vector_store %arg6[%c0_12, %c0_13], %15 {strides = array<i32>} : memref<32x48xf32, #tpu.memory_space<vmem>>, vector<32x48xf32>,
    return
  }
  func.func @transform_0(%arg0: i32) -> (i32, i32) {
    %c0_i32 = arith.constant 0 : i32
    %c0_i32_0 = arith.constant 0 : i32
    return %arg0, %c0_i32 : i32, i32
  }
  func.func @transform_1(%arg0: i32) -> (i32, i32) {
    %c0_i32 = arith.constant 0 : i32
    %c0_i32_0 = arith.constant 0 : i32
    %c0_i32_1 = arith.constant 0 : i32
    return %c0_i32, %c0_i32_0 : i32, i32
  }
  func.func @transform_2(%arg0: i32) -> (i32, i32) {
    %c0_i32 = arith.constant 0 : i32
    %c0_i32_0 = arith.constant 0 : i32
    %c0_i32_1 = arith.constant 0 : i32
    return %c0_i32, %c0_i32_0 : i32, i32
  }
  func.func @transform_3(%arg0: i32) -> (i32, i32) {
    %c0_i32 = arith.constant 0 : i32
    %c0_i32_0 = arith.constant 0 : i32
    %c0_i32_1 = arith.constant 0 : i32
    return %c0_i32, %c0_i32_0 : i32, i32
  }
  func.func @transform_4(%arg0: i32) -> (i32, i32) {
    %c0_i32 = arith.constant 0 : i32
    %c0_i32_0 = arith.constant 0 : i32
    %c0_i32_1 = arith.constant 0 : i32
    return %c0_i32, %c0_i32_0 : i32, i32
  }
  func.func @transform_5(%arg0: i32) -> (i32, i32) {
    %c0_i32 = arith.constant 0 : i32
    %c0_i32_0 = arith.constant 0 : i32
    return %arg0, %c0_i32 : i32, i32
  }
}

</mosaic_0001>

<bundles_post_ra>
// kernel: tpu_custom_call.1
= control target key start
LH: loop header
LB: loop body
LE: loop exit
PB: predicated region body
PF: predicated region fallthrough
CT: control target
= control target key end

     0   :  { %s674_s18 = smov 0   ;;  %s740_s0 = inlined_call_operand.vmem [shape: f32[64,32], index: 0, kind: input, shape index: {}]   ;;  %s741_s1 = inlined_call_operand.vmem [shape: f32[32,64], index: 1, kind: input, shape index: {}]   ;;  %s742_s2 = inlined_call_operand.vmem [shape: f32[1,64], index: 2, kind: input, shape index: {}]   ;;  %s743_s3 = inlined_call_operand.vmem [shape: f32[64,48], index: 3, kind: input, shape index: {}]   ;;  %s744_s4 = inlined_call_operand.vmem [shape: f32[1,48], index: 4, kind: input, shape index: {}]   ;;  %s745_s5 = inlined_call_operand.vmem [shape: f32[64,48], index: 5, kind: output, shape index: {}]  }
   0x1 LB: > { %s527_s19 = sadd.s32 4294967295, %s642_s18   ;;  %p531_p0 = scmp.ge.s32.totalorder %s642_s18, 1  ;;  %s642_s18 = sphi %s674_s18, %s15_s18  }
   0x2   : > { %p188_p1 = scmp.lt.s32.totalorder %s642_s18, 3 }
   0x4   : > { %p189_p2 = pnand %p531_p0, %p188_p1 }
   0x5   : > { %v232_v0 = vld [vmem:[%s741_s1] sm:$0xff] (!%p189_p2)  ;;  %v233_v1 = vld [vmem:[%s741_s1 + $0x8] sm:$0xff] (!%p189_p2)  ;;  %v234_v2 = vld [vmem:[%s741_s1 + $0x10] sm:$0xff] (!%p189_p2)  ;;  %s532_s26 = sshll.u32 (!%p189_p2), %s527_s19, 2  ;;  %vm243_vm0 = vcmask (!%p189_p2), 261120   ;;  %vm368_vm3 = vcmask (!%p189_p2), 523264  }
   0x6   : > { %192 = sbr.rel (%p189_p2) target bundleno = 457 (0x1c9), region = 40  ;;  %v604_v3 = vpack.c.bf16 (!%p189_p2), %v233_v1, %v232_v0  ;;  %v235_v4 = vld [vmem:[%s741_s1 + $0x18] sm:$0xff] (!%p189_p2)  ;;  %p217_p3 = scmp.lt.s32.totalorder (!%p189_p2), %s532_s26, 7  ;;  %v353_v5 = vld [vmem:[%s743_s3] sm:$0xff] (!%p189_p2)  ;;  %v354_v6 = vld [vmem:[%s743_s3 + $0x8] sm:$0xff] (!%p189_p2)  ;;  %vm466_vm6 = vcmask (!%p189_p2), 392192  }
   0x7   : > { %v608_v7 = vpack.c.bf16 (!%p189_p2), %v235_v4, %v234_v2  ;;  %v612_v8 = vpack.c.bf16 (!%p189_p2), %v354_v6, %v353_v5  ;;  %v355_v9 = vld [vmem:[%s743_s3 + $0x10] sm:$0xff] (!%p189_p2)  ;;  %v356_v10 = vld [vmem:[%s743_s3 + $0x18] sm:$0xff] (!%p189_p2)  ;;  %v357_v16 = vld [vmem:[%s743_s3 + $0x20] sm:$0xff] (!%p189_p2) }
   0x8   : > { %605 = vmatprep.subr.bf16.mxu0 (!%p189_p2), %v604_v3  ;;  %v616_v11 = vpack.c.bf16 (!%p189_p2), %v356_v10, %v355_v9  ;;  %v358_v17 = vld [vmem:[%s743_s3 + $0x28] sm:$0xff] (!%p189_p2)  ;;  %v359_v19 = vld [vmem:[%s743_s3 + $0x30] sm:$0xff] (!%p189_p2)  ;;  %v360_v20 = vld [vmem:[%s743_s3 + $0x38] sm:$0xff] (!%p189_p2) }
   0x9   : > { %607 = vmatpush3.bf16.msra.mxu0 (!%p189_p2), %v604_v3  ;;  %613 = vmatprep.subr.bf16.mxu1 (!%p189_p2), %v612_v8  ;;  %v620_v18 = vpack.c.bf16 (!%p189_p2), %v358_v17, %v357_v16  ;;  %v624_v21 = vpack.c.bf16 (!%p189_p2), %v360_v20, %v359_v19  ;;  %v536_v22 = vld [vmem:[%s742_s2] ss:$0 sm:$0xff] (!%p189_p2) }
   0xa   : > { %609 = vmatprep.subr.bf16.mxu0 (!%p189_p2), %v608_v7  ;;  %615 = vmatpush3.bf16.msra.mxu1 (!%p189_p2), %v612_v8  ;;  %v541_v39 = vld [vmem:[%s744_s4] ss:$0 sm:$0xff] (!%p189_p2) }
   0xb   : > { %617 = vmatprep.subr.bf16.mxu1 (!%p189_p2), %v616_v11 }
   0xd   : > { %s747_s26 = smov (!%p217_p3, %s532_s26), 7  ;;  %611 = vmatpush3.bf16.msra.mxu0 %v608_v7 }
   0xe   : > { %s533_s12 = sshll.u32 %s747_s26, 3  ;;  %619 = vmatpush3.bf16.msra.mxu1 %v616_v11 }
   0xf   : > { %s220_s15 = scalar_lea.vmem %s740_s0, %s533_s12  ;;  %621 = vmatprep.subr.bf16.mxu1 %v620_v18  ;;  %s226_s7 = scalar_lea.vmem %s745_s5, %s533_s12 }
  0x10   : > { %v228_v12 = vld [vmem:[%s220_s15] sm:$0xff]  ;;  %v229_v13 = vld [vmem:[%s220_s15 + $0x8] sm:$0xff]  ;;  %v230_v14 = vld [vmem:[%s220_s15 + $0x10] sm:$0xff] }
  0x11   : > { %576 = vmatprep.mubr.msk.f32.mxu0 %vm243_vm0, %v228_v12  ;;  %v231_v15 = vld [vmem:[%s220_s15 + $0x18] sm:$0xff] }
  0x12   : > { %577 = vmatmul.mubr.msk.f32.vlgmr.msra.gmra.mrb[0].mxu0 %vm243_vm0, %v229_v13  ;;  %623 = vmatpush3.bf16.msra.mxu1 %v620_v18 }
  0x13   : > { %579 = vmatprep.mubr.msk.f32.mxu0 %vm243_vm0, %v230_v14  ;;  %625 = vmatprep.subr.bf16.mxu1 %v624_v21 }
  0x16   : > { %580 = vmatmul.mubr.msk.f32.gmra.mrb[2].mxu0 %vm243_vm0, %v231_v15  ;;  %627 = vmatpush3.bf16.msra.mxu1 %v624_v21 }
  0xe5   : > { %v578_v23 = vpop.f32.mrb[0].mxu0 }
  0xe6   : > { %v328_v24 = vadd.f32 %v578_v23, %v536_v22  ;;  %v322_v25 = vpop.f32.mrb[1].mxu0 }
  0xe7   : > { %v323_v26 = vadd.f32 %v536_v22, %v322_v25 }
  0xe8   : > { %v346_v27 = vmul.f32 0.1, %v328_v24  ;;  %vm342_vm1 = vcmp.ge.f32.partialorder %v328_v24, 0.0 }
  0xe9   : > { %v581_v28 = vpop.f32.mrb[2].mxu0  ;;  %vm341_vm2 = vcmp.ge.f32.partialorder %v323_v26, 0.0  ;;  %v345_v29 = vmul.f32 0.1, %v323_v26 }
  0xea   : > { %v338_v30 = vadd.f32 %v581_v28, %v536_v22  ;;  %v332_v31 = vpop.f32.mrb[3].mxu0  ;;  %v350_v35 = vsel %vm342_vm1, %v328_v24, %v346_v27 }
  0xeb   : > { %v333_v32 = vadd.f32 %v536_v22, %v332_v31  ;;  %v349_v33 = vsel %vm341_vm2, %v323_v26, %v345_v29 }
  0xec   : > { %v348_v34 = vmul.f32 0.1, %v338_v30  ;;  %598 = vmatprep.mubr.msk.f32.mxu1 %vm368_vm3, %v349_v33  ;;  %vm344_vm4 = vcmp.ge.f32.partialorder %v338_v30, 0.0 }
  0xed   : > { %vm343_vm5 = vcmp.ge.f32.partialorder %v333_v32, 0.0  ;;  %v347_v36 = vmul.f32 0.1, %v333_v32  ;;  %599 = vmatmul.mubr.msk.f32.vlgmr.msra.gmra.mrb[0].mxu1 %vm368_vm3, %v350_v35 }
  0xee   : > { %v352_v38 = vsel %vm344_vm4, %v338_v30, %v348_v34 }
  0xef   : > { %v351_v37 = vsel %vm343_vm5, %v333_v32, %v347_v36 }
  0xf0   : > { %601 = vmatprep.mubr.msk.f32.mxu1 %vm368_vm3, %v351_v37 }
  0xf1   : > { %602 = vmatmul.mubr.msk.f32.gmra.mrb[2].mxu1 %vm368_vm3, %v352_v38 }
 0x1c0   : > { %v600_v40 = vpop.f32.mrb[0].mxu1 }
 0x1c1   : > { %v447_v41 = vpop.f32.mrb[1].mxu1  ;;  %v453_v43 = vadd.f32 %v600_v40, %v541_v39 }
 0x1c2   : > { %v448_v42 = vadd.f32 %v541_v39, %v447_v41 }
 0x1c3   : > { %468 = vst.msk [vmem:[%s226_s7 + $0x8] sm:$0xff] %vm466_vm6, %v453_v43 }
 0x1c4   : > { %467 = vst.msk [vmem:[%s226_s7] sm:$0xff] %vm466_vm6, %v448_v42  ;;  %v603_v44 = vpop.f32.mrb[2].mxu1 }
 0x1c5   : > { %v457_v45 = vpop.f32.mrb[3].mxu1  ;;  %v463_v47 = vadd.f32 %v603_v44, %v541_v39 }
 0x1c6   : > { %v458_v46 = vadd.f32 %v541_v39, %v457_v45 }
 0x1c7   : > { %470 = vst.msk [vmem:[%s226_s7 + $0x18] sm:$0xff] %vm466_vm6, %v463_v47 }
 0x1c8   : > { %469 = vst.msk [vmem:[%s226_s7 + $0x10] sm:$0xff] %vm466_vm6, %v458_v46 }
 0x1c9 PF: > { %s15_s18 = sadd.s32 1, %s642_s18  }
 0x1ca   : > { %p12_p4 = scmp.ge.s32.totalorder %s15_s18, 4  }
 0x1cc   :  { %14 = sbr.rel (!%p12_p4) target bundleno = 1 (0x1), region = 70 }

</bundles_post_ra>
